<compile_context>
chip_gen: v7x
topology: tpu7x:2x2x1
jax: 0.10.0
libtpu: 0.0.40
codegen_flags: <defaults>
</compile_context>

<pallas_src>
import functools

import jax
import jax.numpy as jnp
from jax import lax
from jax.experimental import pallas as pl
from jax.experimental.pallas import tpu as pltpu


def _r_proj_kernel(r_ref, wr_ref, rk_ref):
    # Hoisted relative-position projection rk = r @ W_r^T (batch independent, computed once).
    rk_ref[...] = jnp.dot(r_ref[...], wr_ref[...],
                          preferred_element_type=jnp.float32).astype(rk_ref.dtype)


def _rel_shift(bd, keep_lower, is_first_upper):
    """Exact Transformer-XL _rel_shift of a (Q, R) score tile (R == Q), via one strided XLU roll.

    rolled[i, j] = bd[i, (j - (i+1)) % Q]   (row i rotated right by i+1)
    result[i, j] = rolled[i, j]         for j <= i      (== bd[i, j + Q-1-i])
                 = 0                    for j == i+1
                 = rolled[i+1, j]       for j >  i+1    (== bd[i+1, j-i-2], the torch 'spill')
    """
    q = bd.shape[0]
    rolled = pltpu.roll(bd, shift=1, axis=1, stride=1, stride_axis=0)
    # Row i of `spill` is rolled row i+1 (last row wraps to row 0 but is never selected).
    spill = pltpu.roll(rolled, shift=q - 1, axis=0) if q > 1 else rolled
    return jnp.where(keep_lower, rolled,
                     jnp.where(is_first_upper, jnp.float32(0.0), spill))


def _fused_attn_kernel(eps, n_head, d_head,
                       w_ref, wqkv_ref, rk_ref, rwb_ref, rrb_ref, wo_ref,
                       maskb_ref, g_ref, b_ref, o_ref):
    """One batch element per program: packed QKV -> per-head AC/BD -> rel_shift -> softmax -> AV
    -> packed o_net matmul -> residual + post-LayerNorm.  Nothing round-trips through HBM."""
    bf16, f32 = jnp.bfloat16, jnp.float32
    hd = n_head * d_head
    x = w_ref[...]                                   # (Q, M) f32 (kept f32 for residual / LN)
    qlen = x.shape[0]
    rlen = rk_ref.shape[0]

    # Packed QKV projection for ALL heads: one deep MXU matmul, bf16 operands, f32 accumulate.
    qkv = jnp.dot(x.astype(bf16), wqkv_ref[...], preferred_element_type=f32)   # (Q, 3*H*D)
    q = qkv[:, :hd]                                  # f32; 1/sqrt(d_head) already folded into W_q
    k = qkv[:, hd:2 * hd].astype(bf16)
    v = qkv[:, 2 * hd:].astype(bf16)
    rwq = (q + rwb_ref[...]).astype(bf16)            # (Q, H*D)  scale*(q0 + r_w_bias)
    rrq = (q + rrb_ref[...]).astype(bf16)            # (Q, H*D)  scale*(q0 + r_r_bias)
    rk = rk_ref[...]                                 # (R, H*D)  bf16, precomputed once
    mask_bias = maskb_ref[...]                       # (Q, K) f32 additive (0 or -1e30)

    # rel_shift selection masks: shared by all heads, hoisted out of the head loop.
    row = lax.broadcasted_iota(jnp.int32, (qlen, rlen), 0)
    col = lax.broadcasted_iota(jnp.int32, (qlen, rlen), 1)
    keep_lower = col <= row
    is_first_upper = col == row + 1

    dn = (((1,), (1,)), ((), ()))                    # contract d_head of both operands
    av_parts = []
    # Static loop over heads (n_head is small); each iteration's (Q,K) tiles are consumed
    # immediately, only the small (Q, d_head) AV outputs stay live for the final lane concat.
    for h in range(n_head):
        lo, hi = h * d_head, (h + 1) * d_head
        ac = lax.dot_general(rwq[:, lo:hi], k[:, lo:hi], dn,
                             preferred_element_type=f32)                  # (Q, K)
        bd = lax.dot_general(rrq[:, lo:hi], rk[:, lo:hi], dn,
                             preferred_element_type=f32)                  # (Q, R)
        bd = _rel_shift(bd, keep_lower, is_first_upper)
        score = ac + bd + mask_bias                   # scale already folded into the q side
        m = jnp.max(score, axis=-1, keepdims=True)
        p = jnp.exp(score - m)
        prob = p * pl.reciprocal(jnp.sum(p, axis=-1, keepdims=True), approx=True)
        av_parts.append(jnp.dot(prob.astype(bf16), v[:, lo:hi],
                                preferred_element_type=f32))              # (Q, D)

    # Lane-dense (Q, H*D) value (no masked scratch stores), one packed o_net matmul.
    attn_vec = jnp.concatenate(av_parts, axis=-1)
    attn_out = jnp.dot(attn_vec.astype(bf16), wo_ref[...],
                       preferred_element_type=f32)                        # (Q, M)

    y = x + attn_out                                  # residual + post-LayerNorm (f32 math)
    mean = jnp.mean(y, axis=-1, keepdims=True)
    var = jnp.mean((y - mean) ** 2, axis=-1, keepdims=True)
    o_ref[...] = ((y - mean) * lax.rsqrt(var + eps) * g_ref[...] + b_ref[...]).astype(o_ref.dtype)


def rel_partial_learnable_mha(params, w, r, r_w_bias, r_r_bias, attn_mask=None):
    """Forward of RelPartialLearnableMultiHeadAttn (mems=None, pre_lnorm=False, eval mode)."""
    n_head, d_head, d_model = params['n_head'], params['d_head'], params['d_model']
    f32, bf16 = jnp.float32, jnp.bfloat16
    qlen, bsz, _ = w.shape
    rlen = r.shape[0]
    klen = qlen                       # TODO(synk): mems (memory concatenation) not implemented
    assert rlen == klen, "this kernel assumes rlen == klen (== qlen, no mems)"
    hd = n_head * d_head
    scale = 1.0 / (d_head ** 0.5)

    # ---- static weight prep (once): packed, lane-dense, bf16 MXU operands; scale folded in ----
    Wqkv = params['w_qkv'].T.astype(f32)                       # (M, 3*H*D) = [q | k | v]
    Wqkv = Wqkv.at[:, :hd].multiply(scale).astype(bf16)        # fold softmax scale into W_q
    Wr = params['w_r'].T.astype(bf16)                          # (M, H*D)
    Wo = params['w_o'].T.astype(bf16)                          # (H*D, M)
    gamma = params['ln_gamma'].reshape(1, d_model).astype(f32)
    beta = params['ln_beta'].reshape(1, d_model).astype(f32)
    rwb = (r_w_bias.reshape(1, hd) * scale).astype(f32)
    rrb = (r_r_bias.reshape(1, hd) * scale).astype(f32)

    # Additive mask bias (2-D mask broadcast over batch & head, like torch attn_mask[None,:,:,None]).
    if attn_mask is None:
        mask_bias = jnp.zeros((qlen, klen), f32)
    else:
        assert attn_mask.ndim == 2     # TODO(synk): 3-D attn_mask branch not implemented
        mask_bias = jnp.where(attn_mask.astype(jnp.bool_), -1e30, 0.0).astype(f32)

    # ---- hoisted R projection: batch-independent, computed once ----
    rk = pl.pallas_call(
        _r_proj_kernel,
        grid=(1,),
        in_specs=[pl.BlockSpec((rlen, d_model), lambda i: (0, 0)),
                  pl.BlockSpec((d_model, hd), lambda i: (0, 0))],
        out_specs=pl.BlockSpec((rlen, hd), lambda i: (0, 0)),
        out_shape=jax.ShapeDtypeStruct((rlen, hd), bf16),
    )(r.astype(bf16), Wr)

    # ---- activation layout: avoid full HBM transposes when d_model is lane-aligned ----
    # View (qlen, bsz, d_model) as (qlen, bsz*d_model) and let the BlockSpec walk batch along the
    # minor axis (strided DMA per block).  Fallback: explicit transpose to batch-major.
    lane_aligned = (d_model % 128 == 0)
    if lane_aligned:
        w_in = w.reshape(qlen, bsz * d_model).astype(f32)
        w_spec = pl.BlockSpec((qlen, d_model), lambda b: (0, b))
        out_spec = pl.BlockSpec((qlen, d_model), lambda b: (0, b))
        out_shape = jax.ShapeDtypeStruct((qlen, bsz * d_model), f32)
    else:
        w_in = jnp.transpose(w, (1, 0, 2)).astype(f32)          # (B, Q, M): extra HBM pass
        w_spec = pl.BlockSpec((None, qlen, d_model), lambda b: (b, 0, 0))
        out_spec = pl.BlockSpec((None, qlen, d_model), lambda b: (b, 0, 0))
        out_shape = jax.ShapeDtypeStruct((bsz, qlen, d_model), f32)

    # Constant-across-grid blocks: single VMEM buffer (no pointless double buffering).
    const = dict(pipeline_mode=pl.Buffered(1))
    in_specs = [
        w_spec,                                                           # activations (per batch)
        pl.BlockSpec((d_model, 3 * hd), lambda b: (0, 0), **const),       # packed qkv weight
        pl.BlockSpec((rlen, hd), lambda b: (0, 0), **const),              # precomputed r @ Wr
        pl.BlockSpec((1, hd), lambda b: (0, 0), **const),                 # scale * r_w_bias
        pl.BlockSpec((1, hd), lambda b: (0, 0), **const),                 # scale * r_r_bias
        pl.BlockSpec((hd, d_model), lambda b: (0, 0), **const),           # packed o_net weight
        pl.BlockSpec((qlen, klen), lambda b: (0, 0), **const),            # additive mask bias
        pl.BlockSpec((1, d_model), lambda b: (0, 0), **const),            # LN gamma
        pl.BlockSpec((1, d_model), lambda b: (0, 0), **const),            # LN beta
    ]

    # Scoped-VMEM budget: raise only when the resident block set needs it (production sizes).
    bytes_resident = (
        2 * 2 * qlen * d_model * 4                  # in/out activation blocks, double-buffered
        + (3 * hd + hd) * d_model * 2               # Wqkv + Wo (bf16, single-buffered)
        + rlen * hd * 2                             # rk (bf16)
        + qlen * klen * 4                           # mask bias (f32)
        + (2 * hd + 2 * d_model) * 4                # biases + LN params
    )
    vmem_limit = None
    if bytes_resident > 12 * 1024 * 1024:
        # v5e (16 MiB) / v6e (32 MiB) default scoped limits are too small at production sizes;
        # both have 128 MiB physical.  TODO(synk): v7x (64 MiB physical) wants Q-tiling instead.
        vmem_limit = 100 * 1024 * 1024

    kernel = functools.partial(_fused_attn_kernel, 1e-5, n_head, d_head)
    out = pl.pallas_call(
        kernel,
        grid=(bsz,),
        in_specs=in_specs,
        out_specs=out_spec,
        out_shape=out_shape,
        compiler_params=pltpu.CompilerParams(
            dimension_semantics=("parallel",),      # batch axis -> both TCs on v7x for bsz >= 2
            vmem_limit_bytes=vmem_limit),
    )(w_in, Wqkv, rk, rwb, rrb, Wo, mask_bias, gamma, beta)

    if lane_aligned:
        return out.reshape(qlen, bsz, d_model)
    return jnp.transpose(out, (1, 0, 2))            # (qlen, bsz, d_model)


if __name__ == "__main__":
    # Small but layout-realistic shapes: d_model and rlen are multiples of 128 so the lane-dense
    # fast path, the strided rel-shift roll, and unmasked stores are all exercised.
    n_head, d_head, d_model = 4, 32, 128
    qlen, bsz = 128, 2
    rlen = qlen

    key = jax.random.PRNGKey(0)
    ks = jax.random.split(key, 7)
    init = lambda k, shape: 0.02 * jax.random.normal(k, shape, jnp.float32)

    params = {
        'n_head': n_head, 'd_head': d_head, 'd_model': d_model,
        'w_qkv': init(ks[0], (3 * n_head * d_head, d_model)),   # qkv_net.weight
        'w_r':   init(ks[1], (n_head * d_head, d_model)),       # r_net.weight
        'w_o':   init(ks[2], (d_model, n_head * d_head)),       # o_net.weight
        'ln_gamma': jnp.ones((d_model,), jnp.float32),           # layer_norm.weight
        'ln_beta':  jnp.zeros((d_model,), jnp.float32),          # layer_norm.bias
    }

    w = jax.random.normal(ks[3], (qlen, bsz, d_model), jnp.float32)
    r = jax.random.normal(ks[4], (rlen, d_model), jnp.float32)
    r_w_bias = init(ks[5], (n_head, d_head))
    r_r_bias = init(ks[6], (n_head, d_head))

    out = rel_partial_learnable_mha(params, w, r, r_w_bias, r_r_bias, attn_mask=None)
    out = jax.block_until_ready(out)
    assert out.shape == (qlen, bsz, d_model)
    assert bool(jnp.all(jnp.isfinite(out)))
    print("KERNEL_OK")
</pallas_src>

<mosaic_0001>
module attributes {stable_mosaic.version = 11 : i64} {
  func.func @_r_proj_kernel(%arg0: i32, %arg1: memref<128x128xbf16, #tpu.memory_space<vmem>>, %arg2: memref<128x128xbf16, #tpu.memory_space<vmem>>, %arg3: memref<128x128xbf16, #tpu.memory_space<vmem>>) attributes {dimension_semantics = [#tpu.dimension_semantics<arbitrary>], iteration_bounds = array<i64: 1>, scalar_prefetch = 0 : i64, scratch_operands = 0 : i64, tpu.core_type = #tpu.core_type<tc>, window_params = [{pipeline_mode = #tpu.pipeline_mode<synchronous>, transform_indices = @transform_0, window_bounds = array<i64: 128, 128>}, {pipeline_mode = #tpu.pipeline_mode<synchronous>, transform_indices = @transform_1, window_bounds = array<i64: 128, 128>}, {pipeline_mode = #tpu.pipeline_mode<synchronous>, transform_indices = @transform_2, window_bounds = array<i64: 128, 128>}]} {
    %c0 = arith.constant 0 : index
    %c0_0 = arith.constant 0 : index
    %0 = vector.load %arg1[%c0, %c0_0] : memref<128x128xbf16, #tpu.memory_space<vmem>>, vector<128x128xbf16>
    %c0_1 = arith.constant 0 : index
    %c0_2 = arith.constant 0 : index
    %1 = vector.load %arg2[%c0_1, %c0_2] : memref<128x128xbf16, #tpu.memory_space<vmem>>, vector<128x128xbf16>
    %cst = arith.constant dense<0.000000e+00> : vector<128x128xf32>
    %2 = tpu.matmul %0, %1, %cst {dimension_numbers = #tpu.dot_dimension_numbers<[1], [0], [0], [1], [0, 0, 1, 1], [], []>} : vector<128x128xbf16>, vector<128x128xbf16>, vector<128x128xf32> -> vector<128x128xf32>
    %3 = arith.truncf %2 : vector<128x128xf32> to vector<128x128xbf16>
    %c0_3 = arith.constant 0 : index
    %c0_4 = arith.constant 0 : index
    %4 = vector.load %arg3[%c0_3, %c0_4] : memref<128x128xbf16, #tpu.memory_space<vmem>>, vector<128x128xbf16>
    tpu.vector_store %arg3[%c0_3, %c0_4], %3 {strides = array<i32>} : memref<128x128xbf16, #tpu.memory_space<vmem>>, vector<128x128xbf16>,
    return
  }
  func.func @transform_0(%arg0: i32) -> (i32, i32) {
    %c0_i32 = arith.constant 0 : i32
    %c0_i32_0 = arith.constant 0 : i32
    %c0_i32_1 = arith.constant 0 : i32
    return %c0_i32, %c0_i32_0 : i32, i32
  }
  func.func @transform_1(%arg0: i32) -> (i32, i32) {
    %c0_i32 = arith.constant 0 : i32
    %c0_i32_0 = arith.constant 0 : i32
    %c0_i32_1 = arith.constant 0 : i32
    return %c0_i32, %c0_i32_0 : i32, i32
  }
  func.func @transform_2(%arg0: i32) -> (i32, i32) {
    %c0_i32 = arith.constant 0 : i32
    %c0_i32_0 = arith.constant 0 : i32
    %c0_i32_1 = arith.constant 0 : i32
    return %c0_i32, %c0_i32_0 : i32, i32
  }
}

</mosaic_0001>

<bundles_post_ra>
// kernel: tpu_custom_call.1
= control target key start
LH: loop header
LB: loop body
LE: loop exit
PB: predicated region body
PF: predicated region fallthrough
CT: control target
= control target key end

     0   :  { %7 = vsyncpa [#allocation3], 0  ;;  %s681_s0 = inlined_call_operand.hbm [shape: bf16[128,128], index: 0, kind: input, shape index: {}]   ;;  %s682_s1 = inlined_call_operand.hbm [shape: bf16[128,128], index: 1, kind: input, shape index: {}]   ;;  %s683_s2 = inlined_call_operand.hbm [shape: bf16[128,128], index: 2, kind: output, shape index: {}]  }
   0x1   :  { %8 = vsyncpa [#allocation6], 0 }
   0x2   :  { %9 = vsyncpa [#allocation4], 0  ;;  %s616_s9 = smov [#allocation2]   ;;  %s544_s13 = scalar_lea.hbm %s681_s0, 1024 }
   0x3   :  { %s15_s10 = sshll.u32 %s616_s9, 4  ;;  %p545_p0 = scmp.ne.s32.totalorder %s681_s0, %s544_s13  ;;  %s16_s10 = int_to_ptr.vmem [resolvable:$true] %s15_s10 }
   0x4   :  { %p548_p1 = scmp.lt.u32.totalorder %s544_s13, %s681_s0 }
   0x6   :  { %p550_p2 = pnand %p548_p1, %p545_p0 }
   0x8   :  { %553 = shalt.err (!%p550_p2)
}
   0x9   :  { %s554_s18 = scalar_lea.vmem %s16_s10, 1024  ;;  %p559_p4 = scmp.lt.s32.totalorder %s16_s10, %s16_s10 }
   0xa   :  { %p555_p3 = scmp.ne.s32.totalorder %s16_s10, %s554_s18  ;;  %p560_p5 = scmp.lt.s32.totalorder %s554_s18, %s554_s18 }
   0xc   :  { %p561_p6 = por %p560_p5, %p559_p4 }
   0xe   :  { %p562_p7 = pnand %p561_p6, %p555_p3 }
  0x10   :  { %565 = shalt.err (!%p562_p7)
}
  0x11   :  { %s617_s19 = smov 64   ;;  %s618_s20 = smov 4  }
  0x12   :  { %21 = dma.hbm_to_vmem [thread:$0]  %s681_s0, 1024, %s16_s10, [#allocation3], %s617_s19, %s617_s19, %s618_s20  }
  0x13   :  { %s619_s23 = smov [#allocation5]   ;;  %s566_s27 = scalar_lea.hbm %s682_s1, 1024 }
  0x14   :  { %s27_s24 = sshll.u32 %s619_s23, 4  ;;  %p567_p8 = scmp.ne.s32.totalorder %s682_s1, %s566_s27  ;;  %s28_s24 = int_to_ptr.vmem [resolvable:$true] %s27_s24 }
  0x15   :  { %p570_p9 = scmp.lt.u32.totalorder %s566_s27, %s682_s1 }
  0x17   :  { %p572_p10 = pnand %p570_p9, %p567_p8 }
  0x19   :  { %575 = shalt.err (!%p572_p10)
}
  0x1a   :  { %s576_s4 = scalar_lea.vmem %s28_s24, 1024  ;;  %p581_p12 = scmp.lt.s32.totalorder %s28_s24, %s28_s24 }
  0x1b   :  { %p577_p11 = scmp.ne.s32.totalorder %s28_s24, %s576_s4  ;;  %p582_p13 = scmp.lt.s32.totalorder %s576_s4, %s576_s4 }
  0x1d   :  { %p583_p0 = por %p582_p13, %p581_p12 }
  0x1f   :  { %p584_p1 = pnand %p583_p0, %p577_p11 }
  0x21   :  { %587 = shalt.err (!%p584_p1)
}
  0x22   :  { %33 = dma.hbm_to_vmem [thread:$0]  %s682_s1, 1024, %s28_s24, [#allocation6], %s617_s19, %s617_s19, %s618_s20  }
  0x23   :  { %610 = dma.done.wait [#allocation3], 1024  }
  0x24   :  { %611 = vsyncadd [#allocation3], 4294966272 }
  0x25   :  { %612 = dma.done.wait [#allocation6], 1024  }
  0x26   :  { %613 = vsyncadd [#allocation6], 4294966272  ;;  %v528_v0 = vld [vmem:[#allocation5] sm:$0xff]   ;;  %v529_v1 = vld [vmem:[#allocation5 + $0x8] sm:$0xff]   ;;  %s620_s1 = smov [#allocation7]  }
  0x27   :  { %475 = vmatprep.subr.bf16.mxu0 %v528_v0  ;;  %507 = vmatprep.subr.bf16.mxu1 %v528_v0  ;;  %v530_v2 = vld [vmem:[#allocation5 + $0x10] sm:$0xff]   ;;  %v531_v3 = vld [vmem:[#allocation5 + $0x18] sm:$0xff]   ;;  %v536_v4 = vld [vmem:[#allocation2] sm:$0xff]   ;;  %s351_s6 = sshll.u32 %s620_s1, 4  ;;  %s352_s6 = int_to_ptr.vmem [resolvable:$true] %s351_s6 }
  0x28   :  { %476 = vmatpush3.bf16.msra.mxu0 %v528_v0  ;;  %515 = vmatpush3.bf16.msra.mxu1 %v528_v0  ;;  %v537_v5 = vld [vmem:[#allocation2 + $0x20] sm:$0xff]   ;;  %v533_v7 = vld [vmem:[#allocation5 + $0x28] sm:$0xff]   ;;  %v534_v8 = vld [vmem:[#allocation5 + $0x30] sm:$0xff]   ;;  %s588_s7 = scalar_lea.vmem %s352_s6, 1024  ;;  %p593_p3 = scmp.lt.s32.totalorder %s352_s6, %s352_s6 }
  0x29   :  { %477 = vmatprep.subr.bf16.mxu0 %v529_v1  ;;  %508 = vmatprep.subr.bf16.mxu1 %v529_v1  ;;  %v532_v6 = vld [vmem:[#allocation5 + $0x20] sm:$0xff]   ;;  %v535_v9 = vld [vmem:[#allocation5 + $0x38] sm:$0xff]   ;;  %v538_v10 = vld [vmem:[#allocation2 + $0x8] sm:$0xff]   ;;  %p589_p2 = scmp.ne.s32.totalorder %s352_s6, %s588_s7  ;;  %p594_p4 = scmp.lt.s32.totalorder %s588_s7, %s588_s7 }
  0x2a   :  { %491 = vmatprep.mubr.bf16.mxu0 %v536_v4  ;;  %499 = vmatprep.mubr.bf16.mxu1 %v537_v5  ;;  %v539_v11 = vld [vmem:[#allocation2 + $0x28] sm:$0xff]   ;;  %v540_v12 = vld [vmem:[#allocation2 + $0x10] sm:$0xff]   ;;  %v542_v14 = vld [vmem:[#allocation2 + $0x18] sm:$0xff]  }
  0x2b   :  { %v541_v13 = vld [vmem:[#allocation2 + $0x30] sm:$0xff]   ;;  %v543_v15 = vld [vmem:[#allocation2 + $0x38] sm:$0xff]   ;;  %p595_p5 = por %p594_p4, %p593_p3 }
  0x2c   :  { %478 = vmatpush3.bf16.msra.mxu0 %v529_v1  ;;  %516 = vmatpush3.bf16.msra.mxu1 %v529_v1 }
  0x2d   :  { %479 = vmatprep.subr.bf16.mxu0 %v530_v2  ;;  %509 = vmatprep.subr.bf16.mxu1 %v530_v2  ;;  %p596_p6 = pnand %p595_p5, %p589_p2 }
  0x30   :  { %480 = vmatpush3.bf16.msra.mxu0 %v530_v2  ;;  %517 = vmatpush3.bf16.msra.mxu1 %v530_v2 }
  0x31   :  { %481 = vmatprep.subr.bf16.mxu0 %v531_v3  ;;  %510 = vmatprep.subr.bf16.mxu1 %v531_v3 }
  0x34   :  { %482 = vmatpush3.bf16.msra.mxu0 %v531_v3  ;;  %518 = vmatpush3.bf16.msra.mxu1 %v531_v3 }
  0x35   :  { %483 = vmatprep.subr.bf16.mxu0 %v532_v6  ;;  %511 = vmatprep.subr.bf16.mxu1 %v532_v6 }
  0x38   :  { %484 = vmatpush3.bf16.msra.mxu0 %v532_v6  ;;  %519 = vmatpush3.bf16.msra.mxu1 %v532_v6 }
  0x39   :  { %485 = vmatprep.subr.bf16.mxu0 %v533_v7  ;;  %512 = vmatprep.subr.bf16.mxu1 %v533_v7 }
  0x3c   :  { %486 = vmatpush3.bf16.msra.mxu0 %v533_v7  ;;  %520 = vmatpush3.bf16.msra.mxu1 %v533_v7 }
  0x3d   :  { %487 = vmatprep.subr.bf16.mxu0 %v534_v8  ;;  %513 = vmatprep.subr.bf16.mxu1 %v534_v8 }
  0x40   :  { %488 = vmatpush3.bf16.msra.mxu0 %v534_v8  ;;  %521 = vmatpush3.bf16.msra.mxu1 %v534_v8 }
  0x41   :  { %489 = vmatprep.subr.bf16.mxu0 %v535_v9  ;;  %514 = vmatprep.subr.bf16.mxu1 %v535_v9 }
  0x44   :  { %490 = vmatpush3.bf16.msra.mxu0 %v535_v9  ;;  %522 = vmatpush3.bf16.msra.mxu1 %v535_v9 }
  0x47   :  { %492 = vmatmul.mubr.bf16.vlgmr.msra.gmra.mrb[0].mxu0 %v538_v10  ;;  %500 = vmatmul.mubr.bf16.vlgmr.msra.gmra.mrb[0].mxu1 %v539_v11 }
  0x48   :  { %495 = vmatprep.mubr.bf16.mxu0 %v540_v12  ;;  %503 = vmatprep.mubr.bf16.mxu1 %v541_v13 }
  0x4f   :  { %496 = vmatmul.mubr.bf16.gmra.mrb[4].mxu0 %v542_v14  ;;  %504 = vmatmul.mubr.bf16.gmra.mrb[4].mxu1 %v543_v15 }
 0x11a   :  { %v493_v16 = vpop.f32.mrb[0].mxu0  ;;  %v501_v17 = vpop.f32.mrb[0].mxu1 }
 0x11b   :  { %v203_v18 = vpop.f32.mrb[1].mxu0  ;;  %v235_v19 = vpop.f32.mrb[1].mxu1 }
 0x11c   :  { %v494_v20 = vpop.f32.mrb[2].mxu0  ;;  %v502_v21 = vpop.f32.mrb[2].mxu1 }
 0x11d   :  { %v420_v22 = vpack.c.bf16 %v494_v20, %v493_v16  ;;  %v440_v23 = vpack.c.bf16 %v502_v21, %v501_v17  ;;  %v206_v24 = vpop.f32.mrb[3].mxu0  ;;  %v238_v25 = vpop.f32.mrb[3].mxu1 }
 0x11e   :  { %v415_v26 = vpack.c.bf16 %v206_v24, %v203_v18  ;;  %v435_v27 = vpack.c.bf16 %v238_v25, %v235_v19 }
 0x11f   :  { %452 = vst [vmem:[#allocation7 + $0x8] sm:$0xff] %v420_v22   ;;  %456 = vst [vmem:[#allocation7 + $0x28] sm:$0xff] %v440_v23  }
 0x120   :  { %416 = vst [vmem:[#allocation7] sm:$0xff] %v415_v26   ;;  %455 = vst [vmem:[#allocation7 + $0x20] sm:$0xff] %v435_v27  }
 0x122   :  { %v497_v28 = vpop.f32.mrb[4].mxu0  ;;  %v505_v29 = vpop.f32.mrb[4].mxu1 }
 0x123   :  { %v219_v30 = vpop.f32.mrb[5].mxu0  ;;  %v251_v31 = vpop.f32.mrb[5].mxu1 }
 0x124   :  { %v498_v32 = vpop.f32.mrb[6].mxu0  ;;  %v506_v33 = vpop.f32.mrb[6].mxu1 }
 0x125   :  { %v430_v34 = vpack.c.bf16 %v498_v32, %v497_v28  ;;  %v450_v35 = vpack.c.bf16 %v506_v33, %v505_v29  ;;  %v222_v36 = vpop.f32.mrb[7].mxu0  ;;  %v254_v37 = vpop.f32.mrb[7].mxu1 }
 0x126   :  { %v425_v38 = vpack.c.bf16 %v222_v36, %v219_v30  ;;  %v445_v39 = vpack.c.bf16 %v254_v37, %v251_v31 }
 0x127   :  { %454 = vst [vmem:[#allocation7 + $0x18] sm:$0xff] %v430_v34   ;;  %458 = vst [vmem:[#allocation7 + $0x38] sm:$0xff] %v450_v35  }
 0x128   :  { %453 = vst [vmem:[#allocation7 + $0x10] sm:$0xff] %v425_v38   ;;  %457 = vst [vmem:[#allocation7 + $0x30] sm:$0xff] %v445_v39  }
 0x129   :  { %599 = shalt.err (!%p596_p6)
}
 0x12a   :  { %s600_s10 = scalar_lea.hbm %s683_s2, 1024 }
 0x12b   :  { %p601_p7 = scmp.ne.s32.totalorder %s683_s2, %s600_s10  ;;  %p604_p8 = scmp.lt.u32.totalorder %s600_s10, %s683_s2 }
 0x12d   :  { %p606_p9 = pnand %p604_p8, %p601_p7 }
 0x12f   :  { %609 = shalt.err (!%p606_p9)
}
 0x130   :  { %357 = dma.vmem_to_hbm [thread:$0]  %s352_s6, 1024, %s683_s2, [#allocation4], %s617_s19, %s617_s19, %s618_s20  }
 0x131   :  { %614 = dma.done.wait [#allocation4], 1024  }
 0x132   :  { %615 = vsyncadd [#allocation4], 4294966272 }
 0x133   :  { %361 = vsyncpa [#allocation3], 1 }
 0x134   :  { %362 = vsyncpa [#allocation6], 1 }
 0x135   :  { %363 = vsyncpa [#allocation4], 1 }

</bundles_post_ra>
